<compile_context>
chip_gen: v5e
topology: v5e:2x2
jax: 0.10.0
libtpu: 0.0.40
codegen_flags: <defaults>
</compile_context>

<pallas_src>
import functools
import math

import numpy as np
import jax
import jax.numpy as jnp
from jax import lax
from jax.experimental import pallas as pl
from jax.experimental.pallas import tpu as pltpu


def _round_up(x, m):
    return (x + m - 1) // m * m


def _pick_row_tile(rows):
    for cand in (512, 256, 128, 64, 32, 16, 8):
        if rows % cand == 0:
            return cand
    return rows


# ----------------------- matmul (bf16 MXU, fused bias/act) -------------------
def _matmul_kernel(a_ref, b_ref, bias_ref, o_ref, acc_ref, *, act):
    @pl.when(pl.program_id(2) == 0)
    def _():
        acc_ref[...] = jnp.zeros_like(acc_ref)

    acc_ref[...] += jnp.dot(a_ref[...], b_ref[...],
                            preferred_element_type=jnp.float32)

    @pl.when(pl.program_id(2) == pl.num_programs(2) - 1)
    def _():
        y = acc_ref[...] + bias_ref[...]
        if act == "relu":
            y = jnp.maximum(y, 0.0)
        elif act == "sigmoid":
            y = 1.0 / (1.0 + jnp.exp(-y))
        o_ref[...] = y


def _choose_tiles(M, K, N):
    Mp = _round_up(M, 128)
    Kp = _round_up(K, 128)
    Np = _round_up(N, 128)
    tm = 256 if Mp % 256 == 0 else 128
    # Resident-B fast path: single k/j tile -> the whole weight matrix is
    # DMA'd once and reused for every i step.
    est = (2 * Kp * Np * 2          # B double-buffered (bf16)
           + 2 * tm * Kp * 2        # A tile double-buffered (bf16)
           + 3 * tm * Np * 4)       # acc + 2 output buffers (f32)
    if est <= 20 * 1024 * 1024:
        return Mp, Kp, Np, tm, Kp, Np
    tn = 256 if Np % 256 == 0 else 128
    tk = 512 if Kp % 512 == 0 else (256 if Kp % 256 == 0 else 128)
    return Mp, Kp, Np, tm, tk, tn


def pallas_matmul(a, b, bias=None, act=None):
    """(M,K) @ (K,N) + bias with optional fused relu/sigmoid.

    Inputs are cast to bf16 for the MXU; accumulation stays f32."""
    M, K = a.shape
    K2, N = b.shape
    assert K == K2
    a = a.astype(jnp.bfloat16)
    b = b.astype(jnp.bfloat16)
    Mp, Kp, Np, tm, tk, tn = _choose_tiles(M, K, N)
    if (Mp, Kp) != (M, K):
        a = jnp.pad(a, ((0, Mp - M), (0, Kp - K)))
    if (Kp, Np) != (K, N):
        b = jnp.pad(b, ((0, Kp - K), (0, Np - N)))
    if bias is None:
        bias_row = jnp.zeros((1, Np), jnp.float32)
    else:
        bias_row = jnp.pad(bias.astype(jnp.float32).reshape(1, N),
                           ((0, 0), (0, Np - N)))
    out = pl.pallas_call(
        functools.partial(_matmul_kernel, act=act),
        out_shape=jax.ShapeDtypeStruct((Mp, Np), jnp.float32),
        grid_spec=pltpu.PrefetchScalarGridSpec(
            num_scalar_prefetch=0,
            grid=(Mp // tm, Np // tn, Kp // tk),
            in_specs=[pl.BlockSpec((tm, tk), lambda i, j, k: (i, k)),
                      pl.BlockSpec((tk, tn), lambda i, j, k: (k, j)),
                      pl.BlockSpec((1, tn), lambda i, j, k: (0, j))],
            out_specs=pl.BlockSpec((tm, tn), lambda i, j, k: (i, j)),
            scratch_shapes=[pltpu.VMEM((tm, tn), jnp.float32)]),
        compiler_params=pltpu.CompilerParams(
            dimension_semantics=("parallel", "parallel", "arbitrary"),
            vmem_limit_bytes=32 * 1024 * 1024),
    )(a, b, bias_row)
    return out[:M, :N]


# ------------------- GroupNorm (+ fused residual / ELU) ----------------------
def _gn_kernel(x_ref, g_ref, b_ref, *rest, eps, act, has_res):
    if has_res:
        r_ref, o_ref = rest
    else:
        (o_ref,) = rest
    x = x_ref[...]                              # (G, Cg, HW)
    _, Cg, HW = x.shape
    inv_n = 1.0 / float(Cg * HW)
    m = jnp.sum(jnp.sum(x, axis=2, keepdims=True), axis=1, keepdims=True) * inv_n
    xc = x - m
    v = jnp.sum(jnp.sum(xc * xc, axis=2, keepdims=True),
                axis=1, keepdims=True) * inv_n
    y = xc * lax.rsqrt(v + eps) * g_ref[...] + b_ref[...]
    if has_res:
        y = y + r_ref[...]
    if act == "elu":
        y = jnp.where(y > 0, y, jnp.exp(jnp.minimum(y, 0.0)) - 1.0)
    o_ref[...] = y


def pallas_groupnorm(x, gn, groups=32, eps=1e-5, act=None, residual=None):
    N, C, H, W = x.shape
    G = groups
    Cg = C // G
    HW = H * W
    xr = x.reshape(N * G, Cg, HW).astype(jnp.float32)
    g = gn["gamma"].astype(jnp.float32).reshape(G, Cg, 1)
    b = gn["beta"].astype(jnp.float32).reshape(G, Cg, 1)
    in_specs = [pl.BlockSpec((G, Cg, HW), lambda n: (n, 0, 0)),
                pl.BlockSpec((G, Cg, 1), lambda n: (0, 0, 0)),
                pl.BlockSpec((G, Cg, 1), lambda n: (0, 0, 0))]
    args = [xr, g, b]
    if residual is not None:
        args.append(residual.reshape(N * G, Cg, HW).astype(jnp.float32))
        in_specs.append(pl.BlockSpec((G, Cg, HW), lambda n: (n, 0, 0)))
    out = pl.pallas_call(
        functools.partial(_gn_kernel, eps=eps, act=act,
                          has_res=residual is not None),
        out_shape=jax.ShapeDtypeStruct(xr.shape, jnp.float32),
        grid=(N,),
        in_specs=in_specs,
        out_specs=pl.BlockSpec((G, Cg, HW), lambda n: (n, 0, 0)),
        compiler_params=pltpu.CompilerParams(
            dimension_semantics=("parallel",)),
    )(*args)
    return out.reshape(N, C, H, W)


# ----------------------------- global pooling --------------------------------
def _pool_kernel(x_ref, o_ref, *, op):
    x = x_ref[...]
    if op == "avg":
        o_ref[...] = jnp.mean(x, axis=1, keepdims=True)
    else:
        o_ref[...] = jnp.max(x, axis=1, keepdims=True)


def pallas_global_pool(x, op):
    N, C, H, W = x.shape
    R, HW = N * C, H * W
    xr = x.reshape(R, HW).astype(jnp.float32)
    tr = _pick_row_tile(R)
    out = pl.pallas_call(
        functools.partial(_pool_kernel, op=op),
        out_shape=jax.ShapeDtypeStruct((R, 1), jnp.float32),
        grid=(R // tr,),
        in_specs=[pl.BlockSpec((tr, HW), lambda i: (i, 0))],
        out_specs=pl.BlockSpec((tr, 1), lambda i: (i, 0)),
        compiler_params=pltpu.CompilerParams(
            dimension_semantics=("parallel",)),
    )(xr)
    return out.reshape(N, C, 1, 1)


# ----------------------------- tiled elementwise ------------------------------
def _scale_kernel(x_ref, g_ref, o_ref):
    o_ref[...] = x_ref[...] * g_ref[...]


def pallas_channel_scale(x, gate):
    """x * gate, with gate shaped (N, C, 1, 1); broadcast done in-kernel."""
    N, C, H, W = x.shape
    R, HW = N * C, H * W
    xr = x.reshape(R, HW).astype(jnp.float32)
    gr = gate.reshape(R, 1).astype(jnp.float32)
    tr = _pick_row_tile(R)
    out = pl.pallas_call(
        _scale_kernel,
        out_shape=jax.ShapeDtypeStruct((R, HW), jnp.float32),
        grid=(R // tr,),
        in_specs=[pl.BlockSpec((tr, HW), lambda i: (i, 0)),
                  pl.BlockSpec((tr, 1), lambda i: (i, 0))],
        out_specs=pl.BlockSpec((tr, HW), lambda i: (i, 0)),
        compiler_params=pltpu.CompilerParams(
            dimension_semantics=("parallel",)),
    )(xr, gr)
    return out.reshape(N, C, H, W)


def _mul_kernel(a_ref, b_ref, o_ref):
    o_ref[...] = a_ref[...] * b_ref[...]


def pallas_mul(a, b):
    assert a.shape == b.shape
    N, C, H, W = a.shape
    R, HW = N * C, H * W
    ar = a.reshape(R, HW).astype(jnp.float32)
    br = b.reshape(R, HW).astype(jnp.float32)
    tr = _pick_row_tile(R)
    out = pl.pallas_call(
        _mul_kernel,
        out_shape=jax.ShapeDtypeStruct((R, HW), jnp.float32),
        grid=(R // tr,),
        in_specs=[pl.BlockSpec((tr, HW), lambda i: (i, 0)),
                  pl.BlockSpec((tr, HW), lambda i: (i, 0))],
        out_specs=pl.BlockSpec((tr, HW), lambda i: (i, 0)),
        compiler_params=pltpu.CompilerParams(
            dimension_semantics=("parallel",)),
    )(ar, br)
    return out.reshape(N, C, H, W)


# ----------------- bilinear upsample (align_corners=True) --------------------
def _interp_matrix_np(in_size, out_size):
    if in_size == 1:
        return np.ones((out_size, 1), np.float32)
    M = np.zeros((out_size, in_size), np.float32)
    if out_size == 1:
        M[0, 0] = 1.0
        return M
    f = np.arange(out_size, dtype=np.float64) * (in_size - 1) / (out_size - 1)
    i0 = np.clip(np.floor(f).astype(np.int64), 0, in_size - 2)
    w1 = (f - i0).astype(np.float32)
    rows = np.arange(out_size)
    np.add.at(M, (rows, i0), 1.0 - w1)
    np.add.at(M, (rows, i0 + 1), w1)
    return M


def _bilinear_kernel(x_ref, mh_ref, mwt_ref, o_ref, *, bc, act):
    mh = mh_ref[...]            # (OH, H)
    mwt = mwt_ref[...]          # (W, OW)
    for i in range(bc):
        t = jnp.dot(mh, x_ref[i], preferred_element_type=jnp.float32)
        y = jnp.dot(t, mwt, preferred_element_type=jnp.float32)
        if act == "sigmoid":
            y = 1.0 / (1.0 + jnp.exp(-y))
        o_ref[i] = y


def bilinear_upsample(x, scale, act=None):
    N, C, H, W = x.shape
    OH, OW = H * scale, W * scale
    mh = jnp.asarray(_interp_matrix_np(H, OH))          # (OH, H)
    mwt = jnp.asarray(_interp_matrix_np(W, OW).T)       # (W, OW)
    NC = N * C
    bc = 8 if NC % 8 == 0 else 1
    xr = x.reshape(NC, H, W).astype(jnp.float32)
    out = pl.pallas_call(
        functools.partial(_bilinear_kernel, bc=bc, act=act),
        out_shape=jax.ShapeDtypeStruct((NC, OH, OW), jnp.float32),
        grid=(NC // bc,),
        in_specs=[pl.BlockSpec((bc, H, W), lambda i: (i, 0, 0)),
                  pl.BlockSpec((OH, H), lambda i: (0, 0)),
                  pl.BlockSpec((W, OW), lambda i: (0, 0))],
        out_specs=pl.BlockSpec((bc, OH, OW), lambda i: (i, 0, 0)),
        compiler_params=pltpu.CompilerParams(
            dimension_semantics=("parallel",)),
    )(xr, mh, mwt)
    return out.reshape(N, C, OH, OW)


# ----------------------- conv via im2col + matmul -----------------------------
def _weight_standardize(w):
    # Matches the custom Conv2d.forward: center over (Cin,KH,KW), divide by
    # (sqrt(unbiased var + 1e-12) + 1e-5) per output channel.
    o = w.shape[0]
    mean = jnp.mean(w, axis=(1, 2, 3), keepdims=True)
    w = w - mean
    var = jnp.var(w.reshape(o, -1), axis=1, ddof=1)
    std = jnp.sqrt(var + 1e-12).reshape(o, 1, 1, 1) + 1e-5
    return w / std


def conv2d(x, weight, bias=None, stride=(1, 1), padding=(0, 0),
           dilation=(1, 1), weight_standardize=False, act=None):
    # TODO(synk): fold the KH*KW taps into the matmul reduction grid (shifted
    # index_map per tap) instead of materializing the im2col tensor in HBM.
    if weight_standardize:
        weight = _weight_standardize(weight)
    N, C, H, W = x.shape
    O, _, KH, KW = weight.shape
    sh, sw = stride
    ph, pw = padding
    dh, dw = dilation
    OH = (H + 2 * ph - dh * (KH - 1) - 1) // sh + 1
    OW = (W + 2 * pw - dw * (KW - 1) - 1) // sw + 1
    xb = x.astype(jnp.bfloat16)                      # im2col in bf16
    if KH == 1 and KW == 1 and (sh, sw) == (1, 1) and (ph, pw) == (0, 0):
        cols = xb.transpose(0, 2, 3, 1).reshape(N * H * W, C)
    else:
        xp = jnp.pad(xb, ((0, 0), (0, 0), (ph, ph), (pw, pw)))
        patches = []
        for i in range(KH):
            for j in range(KW):
                h0 = i * dh
                w0 = j * dw
                patches.append(xp[:, :, h0:h0 + sh * (OH - 1) + 1:sh,
                                  w0:w0 + sw * (OW - 1) + 1:sw])
        cols = jnp.stack(patches, axis=2)            # (N, C, KH*KW, OH, OW)
        cols = cols.transpose(0, 3, 4, 1, 2).reshape(N * OH * OW, C * KH * KW)
    wmat = weight.astype(jnp.float32).reshape(O, C * KH * KW).T
    out = pallas_matmul(cols, wmat, bias=bias, act=act)     # (N*OH*OW, O)
    return out.reshape(N, OH, OW, O).transpose(0, 3, 1, 2)


# -------------------- deterministic parameter init ---------------------------
class KeyGen:
    def __init__(self, seed):
        self._key = jax.random.PRNGKey(seed)

    def __call__(self):
        self._key, k = jax.random.split(self._key)
        return k


def _he(kg, o, c, kh, kw):
    fan = c * kh * kw
    return jax.random.normal(kg(), (o, c, kh, kw), jnp.float32) * math.sqrt(2.0 / fan)


def _bias(kg, o):
    return jax.random.normal(kg(), (o,), jnp.float32) * 0.01


def make_gn(ch):
    return {"gamma": jnp.ones((ch,), jnp.float32),
            "beta": jnp.zeros((ch,), jnp.float32)}


def make_bottleneck(kg, inplanes, planes, stride, dilation, downsample):
    width = planes
    p = {
        "conv1": _he(kg, width, inplanes, 1, 1),
        "gn1": make_gn(width),
        "conv2": _he(kg, width, width, 3, 3),
        "gn2": make_gn(width),
        "conv3": _he(kg, planes * 4, width, 1, 1),
        "gn3": make_gn(planes * 4),
        "stride": stride,
        "dilation": dilation,
    }
    if downsample:
        p["down_w"] = _he(kg, planes * 4, inplanes, 1, 1)
        p["down_gn"] = make_gn(planes * 4)
    return p


def build_resnet50_params(kg):
    # resnet50(os=16): stride_list=[1,2,2,1], dilations=[1,1,1,2], no maxpool.
    params = {"conv1_w": _he(kg, 64, 3, 7, 7), "gn1": make_gn(64)}
    inplanes = 64
    cfg = [(64, 3, 1, 1), (128, 4, 2, 1), (256, 6, 2, 1), (512, 3, 1, 2)]
    for idx, (planes, blocks, stride, dilate) in enumerate(cfg, start=1):
        layer = []
        need_ds = (stride != 1 or dilate != 1 or inplanes != planes * 4)
        layer.append(make_bottleneck(kg, inplanes, planes, stride, dilate, need_ds))
        inplanes = planes * 4
        for _ in range(1, blocks):
            layer.append(make_bottleneck(kg, inplanes, planes, 1, dilate, False))
        params["layer%d" % idx] = layer
    return params


def build_ham_params(kg):
    p = {"backbone": build_resnet50_params(kg)}

    def cgn(cin, cout, kh, kw, bias=True):
        return {"w": _he(kg, cout, cin, kh, kw),
                "b": _bias(kg, cout) if bias else None,
                "gn": make_gn(cout)}

    p["aspp_1"] = cgn(2048, 256, 1, 1)
    p["aspp_2"] = cgn(2048, 256, 3, 3)
    p["aspp_3"] = cgn(2048, 256, 3, 3)
    p["aspp_4"] = cgn(2048, 256, 3, 3)
    p["aspp_5"] = cgn(2048, 256, 1, 1)
    p["aspp_o"] = cgn(1280, 256, 3, 3)
    p["se1_w"], p["se1_b"] = _he(kg, 128, 256, 1, 1), _bias(kg, 128)
    p["se2_w"], p["se2_b"] = _he(kg, 256, 128, 1, 1), _bias(kg, 256)
    p["hamin"] = cgn(256, 256, 3, 3)
    p["ham1a"] = cgn(256, 256, 1, 7)
    p["ham1b"] = cgn(256, 128, 7, 1)
    p["ham2a"] = cgn(256, 256, 7, 1)
    p["ham2b"] = cgn(256, 128, 1, 7)
    p["hamse_w"], p["hamse_b"] = _he(kg, 256, 256, 1, 1), _bias(kg, 256)
    p["ham3x3"] = cgn(256, 256, 3, 3, bias=False)
    p["hamo_w"], p["hamo_b"] = _he(kg, 1, 512, 3, 3), _bias(kg, 1)
    return p


# ----------------------------- forward passes --------------------------------
def bottleneck_forward(p, x):
    s, d = p["stride"], p["dilation"]
    out = conv2d(x, p["conv1"], weight_standardize=True)
    out = pallas_groupnorm(out, p["gn1"], act="elu")
    out = conv2d(out, p["conv2"], stride=(s, s), padding=(d, d),
                 dilation=(d, d), weight_standardize=True)
    out = pallas_groupnorm(out, p["gn2"], act="elu")
    out = conv2d(out, p["conv3"], weight_standardize=True)
    if "down_w" in p:
        identity = conv2d(x, p["down_w"], stride=(s, s), weight_standardize=True)
        identity = pallas_groupnorm(identity, p["down_gn"], act=None)
    else:
        identity = x
    # GN(out) + identity + ELU fused into a single kernel.
    return pallas_groupnorm(out, p["gn3"], act="elu", residual=identity)


def resnet_forward(params, x):
    x = conv2d(x, params["conv1_w"], stride=(2, 2), padding=(3, 3))  # plain conv
    x = pallas_groupnorm(x, params["gn1"], act="elu")
    feats = [x]
    for name in ("layer1", "layer2", "layer3", "layer4"):
        for blk in params[name]:
            x = bottleneck_forward(blk, x)
        feats.append(x)
    return feats


def _conv_gn_elu(q, x, padding, dilation):
    y = conv2d(x, q["w"], bias=q["b"], padding=padding, dilation=dilation,
               weight_standardize=True)
    return pallas_groupnorm(y, q["gn"], act="elu")


def ham_forward(p, img):
    feats = resnet_forward(p["backbone"], img)
    a_feat = feats[-1]                                   # (N, 2048, H/8, W/8)

    gap = pallas_global_pool(a_feat, "avg")
    aspp1 = conv2d(gap, p["aspp_1"]["w"], bias=p["aspp_1"]["b"],
                   weight_standardize=True)
    aspp1 = pallas_groupnorm(aspp1, p["aspp_1"]["gn"], act="elu")

    aspp2 = _conv_gn_elu(p["aspp_2"], a_feat, (18, 18), (18, 18))
    aspp3 = _conv_gn_elu(p["aspp_3"], a_feat, (6, 6), (6, 6))
    aspp4 = _conv_gn_elu(p["aspp_4"], a_feat, (3, 3), (3, 3))
    aspp5 = _conv_gn_elu(p["aspp_5"], a_feat, (0, 0), (1, 1))

    aspp1 = jnp.broadcast_to(aspp1, aspp5.shape)         # zeros_like(aspp5)+aspp1
    aspp = jnp.concatenate([aspp1, aspp2, aspp3, aspp4, aspp5], axis=1)
    aspp = _conv_gn_elu(p["aspp_o"], aspp, (1, 1), (1, 1))
    aspp = bilinear_upsample(aspp, 4)

    aspp_mp = pallas_global_pool(aspp, "max")
    se = conv2d(aspp_mp, p["se1_w"], bias=p["se1_b"], act="relu")     # plain conv
    se = conv2d(se, p["se2_w"], bias=p["se2_b"], act="sigmoid")
    aspp = pallas_channel_scale(aspp, se)

    aspp = _conv_gn_elu(p["hamin"], aspp, (1, 1), (1, 1))

    a1 = _conv_gn_elu(p["ham1a"], aspp, (0, 3), (1, 1))
    a1 = _conv_gn_elu(p["ham1b"], a1, (3, 0), (1, 1))
    a2 = _conv_gn_elu(p["ham2a"], aspp, (3, 0), (1, 1))
    a2 = _conv_gn_elu(p["ham2b"], a2, (0, 3), (1, 1))
    asppse = jnp.concatenate([a1, a2], axis=1)

    asppse = conv2d(asppse, p["hamse_w"], bias=p["hamse_b"],
                    weight_standardize=True, act="sigmoid")
    asppse = pallas_mul(asppse, feats[1])
    asppse = _conv_gn_elu(p["ham3x3"], asppse, (1, 1), (1, 1))

    aspp = jnp.concatenate([aspp, asppse], axis=1)
    aspp = conv2d(aspp, p["hamo_w"], bias=p["hamo_b"], padding=(1, 1),
                  weight_standardize=True)
    return bilinear_upsample(aspp, 2, act="sigmoid")


if __name__ == "__main__":
    kg = KeyGen(1)
    params = build_ham_params(kg)
    img = jax.random.normal(jax.random.PRNGKey(0), (1, 3, 32, 32), jnp.float32)
    out = ham_forward(params, img)
    out = jax.block_until_ready(out)
    assert out.shape == (1, 1, 32, 32), out.shape
    assert bool(jnp.all(jnp.isfinite(out)))
    print("KERNEL_OK")
</pallas_src>

<mosaic_0001>
module attributes {stable_mosaic.version = 11 : i64} {
  func.func @_matmul_kernel(%arg0: i32, %arg1: i32, %arg2: i32, %arg3: memref<256x256xbf16, #tpu.memory_space<vmem>>, %arg4: memref<256x128xbf16, #tpu.memory_space<vmem>>, %arg5: memref<1x128xf32, #tpu.memory_space<vmem>>, %arg6: memref<256x128xf32, #tpu.memory_space<vmem>>, %arg7: memref<256x128xf32, #tpu.memory_space<vmem>>) attributes {dimension_semantics = [#tpu.dimension_semantics<parallel>, #tpu.dimension_semantics<parallel>, #tpu.dimension_semantics<arbitrary>], iteration_bounds = array<i64: 1, 1, 1>, scalar_prefetch = 0 : i64, scratch_operands = 1 : i64, tpu.core_type = #tpu.core_type<tc>, window_params = [{transform_indices = @transform_0, window_bounds = array<i64: 256, 256>}, {transform_indices = @transform_1, window_bounds = array<i64: 256, 128>}, {transform_indices = @transform_2, window_bounds = array<i64: 1, 128>}, {transform_indices = @transform_3, window_bounds = array<i64: 256, 128>}]} {
    %c0_i32 = arith.constant 0 : i32
    %0 = arith.cmpi eq, %arg2, %c0_i32 : i32
    %1 = arith.extui %0 : i1 to i32
    %c0_i32_0 = arith.constant 0 : i32
    %2 = arith.cmpi ne, %1, %c0_i32_0 : i32
    scf.if %2 {
      %cst_10 = arith.constant 0.000000e+00 : f32
      %12 = vector.broadcast %cst_10 : f32 to vector<256x128xf32>
      %c0_11 = arith.constant 0 : index
      %c0_12 = arith.constant 0 : index
      %13 = vector.load %arg7[%c0_11, %c0_12] : memref<256x128xf32, #tpu.memory_space<vmem>>, vector<256x128xf32>
      tpu.vector_store %arg7[%c0_11, %c0_12], %12 {strides = array<i32>} : memref<256x128xf32, #tpu.memory_space<vmem>>, vector<256x128xf32>,
    } else {
    }
    %c0 = arith.constant 0 : index
    %c0_1 = arith.constant 0 : index
    %3 = vector.load %arg7[%c0, %c0_1] : memref<256x128xf32, #tpu.memory_space<vmem>>, vector<256x128xf32>
    %c0_2 = arith.constant 0 : index
    %c0_3 = arith.constant 0 : index
    %4 = vector.load %arg3[%c0_2, %c0_3] : memref<256x256xbf16, #tpu.memory_space<vmem>>, vector<256x256xbf16>
    %c0_4 = arith.constant 0 : index
    %c0_5 = arith.constant 0 : index
    %5 = vector.load %arg4[%c0_4, %c0_5] : memref<256x128xbf16, #tpu.memory_space<vmem>>, vector<256x128xbf16>
    %cst = arith.constant dense<0.000000e+00> : vector<256x128xf32>
    %6 = tpu.matmul %4, %5, %cst {dimension_numbers = #tpu.dot_dimension_numbers<[1], [0], [0], [1], [0, 0, 1, 1], [], []>} : vector<256x256xbf16>, vector<256x128xbf16>, vector<256x128xf32> -> vector<256x128xf32>
    %7 = arith.addf %3, %6 : vector<256x128xf32>
    %c0_6 = arith.constant 0 : index
    %c0_7 = arith.constant 0 : index
    %8 = vector.load %arg7[%c0_6, %c0_7] : memref<256x128xf32, #tpu.memory_space<vmem>>, vector<256x128xf32>
    tpu.vector_store %arg7[%c0_6, %c0_7], %7 {strides = array<i32>} : memref<256x128xf32, #tpu.memory_space<vmem>>, vector<256x128xf32>,
    %c0_i32_8 = arith.constant 0 : i32
    %9 = arith.cmpi eq, %arg2, %c0_i32_8 : i32
    %10 = arith.extui %9 : i1 to i32
    %c0_i32_9 = arith.constant 0 : i32
    %11 = arith.cmpi ne, %10, %c0_i32_9 : i32
    scf.if %11 {
      %c0_10 = arith.constant 0 : index
      %c0_11 = arith.constant 0 : index
      %12 = vector.load %arg7[%c0_10, %c0_11] : memref<256x128xf32, #tpu.memory_space<vmem>>, vector<256x128xf32>
      %c0_12 = arith.constant 0 : index
      %c0_13 = arith.constant 0 : index
      %13 = vector.load %arg5[%c0_12, %c0_13] : memref<1x128xf32, #tpu.memory_space<vmem>>, vector<1x128xf32>
      %14 = vector.broadcast %13 : vector<1x128xf32> to vector<256x128xf32>
      %15 = arith.addf %12, %14 : vector<256x128xf32>
      %c0_14 = arith.constant 0 : index
      %c0_15 = arith.constant 0 : index
      %16 = vector.load %arg6[%c0_14, %c0_15] : memref<256x128xf32, #tpu.memory_space<vmem>>, vector<256x128xf32>
      tpu.vector_store %arg6[%c0_14, %c0_15], %15 {strides = array<i32>} : memref<256x128xf32, #tpu.memory_space<vmem>>, vector<256x128xf32>,
    } else {
    }
    return
  }
  func.func @transform_0(%arg0: i32, %arg1: i32, %arg2: i32) -> (i32, i32) {
    %c0_i32 = arith.constant 0 : i32
    return %arg0, %arg2 : i32, i32
  }
  func.func @transform_1(%arg0: i32, %arg1: i32, %arg2: i32) -> (i32, i32) {
    %c0_i32 = arith.constant 0 : i32
    return %arg2, %arg1 : i32, i32
  }
  func.func @transform_2(%arg0: i32, %arg1: i32, %arg2: i32) -> (i32, i32) {
    %c0_i32 = arith.constant 0 : i32
    %c0_i32_0 = arith.constant 0 : i32
    return %c0_i32, %arg1 : i32, i32
  }
  func.func @transform_3(%arg0: i32, %arg1: i32, %arg2: i32) -> (i32, i32) {
    %c0_i32 = arith.constant 0 : i32
    return %arg0, %arg1 : i32, i32
  }
}

</mosaic_0001>

<bundles_post_ra>
// kernel: tpu_custom_call.1
= control target key start
LH: loop header
LB: loop body
LE: loop exit
PB: predicated region body
PF: predicated region fallthrough
CT: control target
= control target key end

     0   :  { %8 = vsyncpa [#allocation4], 0  ;;  %s1221_s0 = inlined_call_operand.hbm [shape: bf16[256,256], index: 0, kind: input, shape index: {}]   ;;  %s1222_s1 = inlined_call_operand.hbm [shape: bf16[256,128], index: 1, kind: input, shape index: {}]   ;;  %s1223_s2 = inlined_call_operand.vmem [shape: f32[1,128], index: 2, kind: input, shape index: {}]   ;;  %s1224_s3 = inlined_call_operand.hbm [shape: f32[256,128], index: 3, kind: output, shape index: {}]  }
   0x1   :  { %9 = vsyncpa [#allocation7], 0 }
   0x2   :  { %10 = vsyncpa [#allocation5], 0  ;;  %s15_s14 = sshll.u32 %s1221_s0, 4  ;;  %s1142_s15 = smov [#allocation3]   ;;  %s16_s14 = int_to_ptr.hbm [resolvable:$true] %s15_s14 }
   0x3   :  { %s17_s16 = sshll.u32 %s1142_s15, 4  ;;  %s28_s19 = sshll.u32 %s1222_s1, 4  ;;  %s18_s16 = int_to_ptr.vmem [resolvable:$true] %s17_s16  ;;  %s29_s19 = int_to_ptr.hbm [resolvable:$true] %s28_s19 }
   0x4   :  { %s1143_s20 = smov 128   ;;  %s1144_s21 = smov 8  }
   0x5   :  { %23 = dma.hbm_to_vmem [thread:$0]  %s16_s14, 4096, %s18_s16, [#allocation4], %s1143_s20, %s1143_s20, %s1144_s21  }
   0x6   :  { %s1145_s22 = smov [#allocation6]   ;;  %s1146_s24 = smov 64  }
   0x7   :  { %s30_s23 = sshll.u32 %s1145_s22, 4  ;;  %s1147_s0 = smov 4   ;;  %s31_s23 = int_to_ptr.vmem [resolvable:$true] %s30_s23 }
   0x8   :  { %36 = dma.hbm_to_vmem [thread:$0]  %s29_s19, 2048, %s31_s23, [#allocation7], %s1146_s24, %s1146_s24, %s1147_s0  }
   0x9   :  { %1136 = dma.done.wait [#allocation4], 4096  }
   0xa   :  { %1137 = vsyncadd [#allocation4], 4294963200 }
   0xb   :  { %1138 = dma.done.wait [#allocation7], 2048  }
   0xc   :  { %1139 = vsyncadd [#allocation7], 4294965248  ;;  %v1031_v0 = vld [vmem:[#allocation6 + $0x38] sm:$0xff]  ;;  %v1030_v2 = vld [vmem:[#allocation6 + $0x30] sm:$0xff]  ;;  %s786_s29 = sshll.u32 %s1224_s3, 4  ;;  %s787_s29 = int_to_ptr.hbm [resolvable:$true] %s786_s29 }
   0xd   :  { %v1039_v1 = vld [vmem:[#allocation6 + $0x78] sm:$0xff]  ;;  %435 = vmatpush.bf16.msra.mxu0 %v1031_v0  ;;  %1040 = vmatpush.bf16.msra.mxu2 %v1031_v0  ;;  %v1038_v3 = vld [vmem:[#allocation6 + $0x70] sm:$0xff]  ;;  %v1029_v4 = vld [vmem:[#allocation6 + $0x28] sm:$0xff] }
   0xe   :  { %524 = vmatpush.bf16.msra.mxu1 %v1039_v1  ;;  %1048 = vmatpush.bf16.msra.mxu3 %v1039_v1  ;;  %v1037_v5 = vld [vmem:[#allocation6 + $0x68] sm:$0xff]  ;;  %v1028_v6 = vld [vmem:[#allocation6 + $0x20] sm:$0xff]  ;;  %v1027_v8 = vld [vmem:[#allocation6 + $0x18] sm:$0xff] }
   0xf   :  { %v1036_v7 = vld [vmem:[#allocation6 + $0x60] sm:$0xff]  ;;  %v1035_v9 = vld [vmem:[#allocation6 + $0x58] sm:$0xff]  ;;  %v1026_v10 = vld [vmem:[#allocation6 + $0x10] sm:$0xff] }
  0x10   :  { %v1034_v11 = vld [vmem:[#allocation6 + $0x50] sm:$0xff]  ;;  %v1025_v12 = vld [vmem:[#allocation6 + $0x8] sm:$0xff]  ;;  %v1024_v14 = vld [vmem:[#allocation6] sm:$0xff] }
  0x11   :  { %436 = vmatpush.bf16.msra.mxu0 %v1030_v2  ;;  %1041 = vmatpush.bf16.msra.mxu2 %v1030_v2  ;;  %v1033_v13 = vld [vmem:[#allocation6 + $0x48] sm:$0xff]  ;;  %v1032_v15 = vld [vmem:[#allocation6 + $0x40] sm:$0xff]  ;;  %v810_v28 = vld [vmem:[#allocation3 + $0x10] sm:$0xf] }
  0x12   :  { %525 = vmatpush.bf16.msra.mxu1 %v1038_v3  ;;  %1049 = vmatpush.bf16.msra.mxu3 %v1038_v3  ;;  %v802_v16 = vld [vmem:[#allocation3] sm:$0xf]  ;;  %v993_v17 = vld [vmem:[#allocation3 + $0x4] sm:$0xf0]  ;;  %v992_v20 = vld [vmem:[#allocation3 + $0x4] sm:$0xf] }
  0x13   :  { %v866_v18 = vld [vmem:[#allocation3 + $0x80] sm:$0xf]  ;;  %v1009_v19 = vld [vmem:[#allocation3 + $0x84] sm:$0xf0]  ;;  %v804_v21 = vld [vmem:[#allocation3 + $0x8] sm:$0xf0]  ;;  %v803_v24 = vor.u32 %v993_v17, %v802_v16 }
  0x14   :  { %v1008_v22 = vld [vmem:[#allocation3 + $0x84] sm:$0xf]  ;;  %v868_v23 = vld [vmem:[#allocation3 + $0x88] sm:$0xf0]  ;;  %v867_v25 = vor.u32 %v1009_v19, %v866_v18  ;;  %v807_v26 = vor.u32 %v992_v20, %v804_v21  ;;  %v995_v29 = vld [vmem:[#allocation3 + $0x14] sm:$0xf0] }
  0x15   :  { %437 = vmatpush.bf16.msra.mxu0 %v1029_v4  ;;  %1042 = vmatpush.bf16.msra.mxu2 %v1029_v4  ;;  %v871_v27 = vor.u32 %v1008_v22, %v868_v23  ;;  %v874_v30 = vld [vmem:[#allocation3 + $0x90] sm:$0xf]  ;;  %v1011_v31 = vld [vmem:[#allocation3 + $0x94] sm:$0xf0]  ;;  %v994_v32 = vld [vmem:[#allocation3 + $0x14] sm:$0xf]  ;;  %v811_v36 = vor.u32 %v995_v29, %v810_v28 }
  0x16   :  { %526 = vmatpush.bf16.msra.mxu1 %v1037_v5  ;;  %1050 = vmatpush.bf16.msra.mxu3 %v1037_v5  ;;  %v812_v33 = vld [vmem:[#allocation3 + $0x18] sm:$0xf0]  ;;  %v1010_v34 = vld [vmem:[#allocation3 + $0x94] sm:$0xf]  ;;  %v875_v37 = vor.u32 %v1011_v31, %v874_v30  ;;  %v818_v40 = vld [vmem:[#allocation3 + $0x20] sm:$0xf] }
  0x17   :  { %v876_v35 = vld [vmem:[#allocation3 + $0x98] sm:$0xf0]  ;;  %v815_v38 = vor.u32 %v994_v32, %v812_v33  ;;  %v997_v41 = vld [vmem:[#allocation3 + $0x24] sm:$0xf0]  ;;  %v882_v42 = vld [vmem:[#allocation3 + $0xa0] sm:$0xf] }
  0x18   :  { %v879_v39 = vor.u32 %v1010_v34, %v876_v35  ;;  %v1013_v43 = vld [vmem:[#allocation3 + $0xa4] sm:$0xf0]  ;;  %v996_v44 = vld [vmem:[#allocation3 + $0x24] sm:$0xf]  ;;  %v820_v45 = vld [vmem:[#allocation3 + $0x28] sm:$0xf0]  ;;  %v819_v48 = vor.u32 %v997_v41, %v818_v40 }
  0x19   :  { %438 = vmatpush.bf16.msra.mxu0 %v1028_v6  ;;  %1043 = vmatpush.bf16.msra.mxu2 %v1028_v6  ;;  %v1012_v46 = vld [vmem:[#allocation3 + $0xa4] sm:$0xf]  ;;  %v884_v47 = vld [vmem:[#allocation3 + $0xa8] sm:$0xf0]  ;;  %v883_v49 = vor.u32 %v1013_v43, %v882_v42  ;;  %v823_v50 = vor.u32 %v996_v44, %v820_v45  ;;  %v826_v52 = vld [vmem:[#allocation3 + $0x30] sm:$0xf] }
  0x1a   :  { %527 = vmatpush.bf16.msra.mxu1 %v1036_v7  ;;  %1051 = vmatpush.bf16.msra.mxu3 %v1036_v7  ;;  %v887_v51 = vor.u32 %v1012_v46, %v884_v47  ;;  %v999_v53 = vld [vmem:[#allocation3 + $0x34] sm:$0xf0]  ;;  %v890_v54 = vld [vmem:[#allocation3 + $0xb0] sm:$0xf]  ;;  %v998_v56 = vld [vmem:[#allocation3 + $0x34] sm:$0xf] }
  0x1b   :  { %v1015_v55 = vld [vmem:[#allocation3 + $0xb4] sm:$0xf0]  ;;  %v828_v57 = vld [vmem:[#allocation3 + $0x38] sm:$0xf0]  ;;  %v1014_v58 = vld [vmem:[#allocation3 + $0xb4] sm:$0xf]  ;;  %v827_v60 = vor.u32 %v999_v53, %v826_v52 }
  0x1c   :  { %v892_v59 = vld [vmem:[#allocation3 + $0xb8] sm:$0xf0]  ;;  %v891_v61 = vor.u32 %v1015_v55, %v890_v54  ;;  %v831_v62 = vor.u32 %v998_v56, %v828_v57  ;;  %v834_v0 = vld [vmem:[#allocation3 + $0x40] sm:$0xf]  ;;  %v1001_v1 = vld [vmem:[#allocation3 + $0x44] sm:$0xf0] }
  0x1d   :  { %439 = vmatpush.bf16.msra.mxu0 %v1027_v8  ;;  %1044 = vmatpush.bf16.msra.mxu2 %v1027_v8  ;;  %v895_v63 = vor.u32 %v1014_v58, %v892_v59  ;;  %v898_v2 = vld [vmem:[#allocation3 + $0xc0] sm:$0xf]  ;;  %v1017_v3 = vld [vmem:[#allocation3 + $0xc4] sm:$0xf0]  ;;  %v1000_v4 = vld [vmem:[#allocation3 + $0x44] sm:$0xf]  ;;  %v835_v8 = vor.u32 %v1001_v1, %v834_v0 }
  0x1e   :  { %528 = vmatpush.bf16.msra.mxu1 %v1035_v9  ;;  %1052 = vmatpush.bf16.msra.mxu3 %v1035_v9  ;;  %v836_v5 = vld [vmem:[#allocation3 + $0x48] sm:$0xf0]  ;;  %v1016_v6 = vld [vmem:[#allocation3 + $0xc4] sm:$0xf]  ;;  %v899_v9 = vor.u32 %v1017_v3, %v898_v2  ;;  %v1002_v16 = vld [vmem:[#allocation3 + $0x54] sm:$0xf] }
  0x1f   :  { %v900_v7 = vld [vmem:[#allocation3 + $0xc8] sm:$0xf0]  ;;  %v844_v17 = vld [vmem:[#allocation3 + $0x58] sm:$0xf0]  ;;  %v1018_v18 = vld [vmem:[#allocation3 + $0xd4] sm:$0xf] }
  0x20   :  { %v908_v19 = vld [vmem:[#allocation3 + $0xd8] sm:$0xf0]  ;;  %v847_v22 = vor.u32 %v1002_v16, %v844_v17  ;;  %v1004_v28 = vld [vmem:[#allocation3 + $0x64] sm:$0xf]  ;;  %v852_v29 = vld [vmem:[#allocation3 + $0x68] sm:$0xf0] }
  0x21   :  { %440 = vmatpush.bf16.msra.mxu0 %v1026_v10  ;;  %1045 = vmatpush.bf16.msra.mxu2 %v1026_v10  ;;  %v839_v10 = vor.u32 %v1000_v4, %v836_v5  ;;  %v911_v23 = vor.u32 %v1018_v18, %v908_v19  ;;  %v1020_v30 = vld [vmem:[#allocation3 + $0xe4] sm:$0xf]  ;;  %v916_v31 = vld [vmem:[#allocation3 + $0xe8] sm:$0xf0]  ;;  %v855_v34 = vor.u32 %v1004_v28, %v852_v29  ;;  %v1006_v40 = vld [vmem:[#allocation3 + $0x74] sm:$0xf] }
  0x22   :  { %529 = vmatpush.bf16.msra.mxu1 %v1034_v11  ;;  %1053 = vmatpush.bf16.msra.mxu3 %v1034_v11  ;;  %v903_v11 = vor.u32 %v1016_v6, %v900_v7  ;;  %v919_v35 = vor.u32 %v1020_v30, %v916_v31  ;;  %v860_v41 = vld [vmem:[#allocation3 + $0x78] sm:$0xf0]  ;;  %v1022_v42 = vld [vmem:[#allocation3 + $0xf4] sm:$0xf] }
  0x23   :  { %v924_v43 = vld [vmem:[#allocation3 + $0xf8] sm:$0xf0]  ;;  %v863_v46 = vor.u32 %v1006_v40, %v860_v41 }
  0x24   :  { %v927_v47 = vor.u32 %v1022_v42, %v924_v43 }
  0x25   :  { %441 = vmatpush.bf16.msra.mxu0 %v1025_v12  ;;  %1046 = vmatpush.bf16.msra.mxu2 %v1025_v12  ;;  %v842_v12 = vld [vmem:[#allocation3 + $0x50] sm:$0xf] }
  0x26   :  { %530 = vmatpush.bf16.msra.mxu1 %v1033_v13  ;;  %1054 = vmatpush.bf16.msra.mxu3 %v1033_v13  ;;  %v1003_v13 = vld [vmem:[#allocation3 + $0x54] sm:$0xf0] }
  0x27   :  { %v843_v20 = vor.u32 %v1003_v13, %v842_v12 }
  0x29   :  { %442 = vmatpush.bf16.msra.mxu0 %v1024_v14  ;;  %1047 = vmatpush.bf16.msra.mxu2 %v1024_v14  ;;  %v906_v14 = vld [vmem:[#allocation3 + $0xd0] sm:$0xf] }
  0x2a   :  { %531 = vmatpush.bf16.msra.mxu1 %v1032_v15  ;;  %1055 = vmatpush.bf16.msra.mxu3 %v1032_v15  ;;  %v1019_v15 = vld [vmem:[#allocation3 + $0xd4] sm:$0xf0] }
  0x2b   :  { %v907_v21 = vor.u32 %v1019_v15, %v906_v14 }
  0x2c   :  { %443 = vmatmul.bf16.vlgmr.msra.gmra.mxu0 %v803_v24  ;;  %483 = vmatmul.bf16.vlgmr.msra.gmra.mxu2 %v867_v25  ;;  %v850_v24 = vld [vmem:[#allocation3 + $0x60] sm:$0xf]  ;;  %v1005_v25 = vld [vmem:[#allocation3 + $0x64] sm:$0xf0] }
  0x2d   :  { %532 = vmatmul.bf16.vlgmr.msra.gmra.mxu1 %v807_v26  ;;  %572 = vmatmul.bf16.vlgmr.msra.gmra.mxu3 %v871_v27  ;;  %v914_v26 = vld [vmem:[#allocation3 + $0xe0] sm:$0xf]  ;;  %v1021_v27 = vld [vmem:[#allocation3 + $0xe4] sm:$0xf0]  ;;  %v851_v32 = vor.u32 %v1005_v25, %v850_v24 }
  0x2e   :  { %v915_v33 = vor.u32 %v1021_v27, %v914_v26 }
  0x3c   :  { %448 = vmatmul.bf16.gmra.mxu0 %v811_v36  ;;  %488 = vmatmul.bf16.gmra.mxu2 %v875_v37  ;;  %v858_v36 = vld [vmem:[#allocation3 + $0x70] sm:$0xf]  ;;  %v1007_v37 = vld [vmem:[#allocation3 + $0x74] sm:$0xf0] }
  0x3d   :  { %537 = vmatmul.bf16.gmra.mxu1 %v815_v38  ;;  %577 = vmatmul.bf16.gmra.mxu3 %v879_v39  ;;  %v922_v38 = vld [vmem:[#allocation3 + $0xf0] sm:$0xf]  ;;  %v1023_v39 = vld [vmem:[#allocation3 + $0xf4] sm:$0xf0]  ;;  %v859_v44 = vor.u32 %v1007_v37, %v858_v36 }
  0x3e   :  { %v923_v45 = vor.u32 %v1023_v39, %v922_v38 }
  0x4c   :  { %453 = vmatmul.bf16.gmra.mxu0 %v819_v48  ;;  %493 = vmatmul.bf16.gmra.mxu2 %v883_v49  ;;  %v1181_v49 = vld [vmem:[%s1223_s2] ss:$0 sm:$0xff]  ;;  %s1148_s2 = smov [#allocation8]  }
  0x4d   :  { %542 = vmatmul.bf16.gmra.mxu1 %v823_v50  ;;  %582 = vmatmul.bf16.gmra.mxu3 %v887_v51  ;;  %s784_s26 = sshll.u32 %s1148_s2, 4  ;;  %s785_s26 = int_to_ptr.vmem [resolvable:$true] %s784_s26 }
  0x5c   :  { %458 = vmatmul.bf16.gmra.mxu0 %v827_v60  ;;  %498 = vmatmul.bf16.gmra.mxu2 %v891_v61 }
  0x5d   :  { %547 = vmatmul.bf16.gmra.mxu1 %v831_v62  ;;  %587 = vmatmul.bf16.gmra.mxu3 %v895_v63 }
  0x6c   :  { %463 = vmatmul.bf16.gmra.mxu0 %v835_v8  ;;  %503 = vmatmul.bf16.gmra.mxu2 %v899_v9 }
  0x6d   :  { %552 = vmatmul.bf16.gmra.mxu1 %v839_v10  ;;  %592 = vmatmul.bf16.gmra.mxu3 %v903_v11 }
  0x7c   :  { %468 = vmatmul.bf16.gmra.mxu0 %v843_v20  ;;  %508 = vmatmul.bf16.gmra.mxu2 %v907_v21 }
  0x7d   :  { %557 = vmatmul.bf16.gmra.mxu1 %v847_v22  ;;  %597 = vmatmul.bf16.gmra.mxu3 %v911_v23 }
  0x8c   :  { %473 = vmatmul.bf16.gmra.mxu0 %v851_v32  ;;  %513 = vmatmul.bf16.gmra.mxu2 %v915_v33 }
  0x8d   :  { %562 = vmatmul.bf16.gmra.mxu1 %v855_v34  ;;  %602 = vmatmul.bf16.gmra.mxu3 %v919_v35 }
  0x9c   :  { %478 = vmatmul.bf16.gmra.mxu0 %v859_v44  ;;  %518 = vmatmul.bf16.gmra.mxu2 %v923_v45 }
  0x9d   :  { %567 = vmatmul.bf16.gmra.mxu1 %v863_v46  ;;  %607 = vmatmul.bf16.gmra.mxu3 %v927_v47 }
  0xa9   :  { %v444_v48 = vpop.f32.mrf.mxu0 }
  0xaa   :  { %v533_v50 = vpop.f32.mrf.mxu1 }
  0xab   :  { %v534_v51 = vadd.f32 %v533_v50, %v444_v48 }
  0xad   :  { %v716_v52 = vadd.f32 %v1181_v49, %v534_v51 }
  0xaf   :  { %748 = vst [vmem:[#allocation8] sm:$0xff] %v716_v52  ;;  %v484_v53 = vpop.f32.mrf.mxu2 }
  0xb0   :  { %v573_v54 = vpop.f32.mrf.mxu3 }
  0xb1   :  { %v574_v55 = vadd.f32 %v573_v54, %v484_v53  ;;  %v446_v56 = vpop.f32.mrf.mxu0 }
  0xb2   :  { %v535_v57 = vpop.f32.mrf.mxu1 }
  0xb3   :  { %v732_v58 = vadd.f32 %v1181_v49, %v574_v55  ;;  %v536_v59 = vadd.f32 %v535_v57, %v446_v56 }
  0xb5   :  { %764 = vst [vmem:[#allocation8 + $0x80] sm:$0xff] %v732_v58  ;;  %v717_v60 = vadd.f32 %v1181_v49, %v536_v59 }
  0xb7   :  { %749 = vst [vmem:[#allocation8 + $0x8] sm:$0xff] %v717_v60  ;;  %v486_v61 = vpop.f32.mrf.mxu2 }
  0xb8   :  { %v575_v62 = vpop.f32.mrf.mxu3 }
  0xb9   :  { %v576_v63 = vadd.f32 %v575_v62, %v486_v61  ;;  %v449_v0 = vpop.f32.mrf.mxu0 }
  0xba   :  { %v538_v1 = vpop.f32.mrf.mxu1 }
  0xbb   :  { %v733_v2 = vadd.f32 %v1181_v49, %v576_v63  ;;  %v539_v3 = vadd.f32 %v538_v1, %v449_v0 }
  0xbd   :  { %765 = vst [vmem:[#allocation8 + $0x88] sm:$0xff] %v733_v2  ;;  %v718_v4 = vadd.f32 %v1181_v49, %v539_v3 }
  0xbf   :  { %750 = vst [vmem:[#allocation8 + $0x10] sm:$0xff] %v718_v4  ;;  %v489_v5 = vpop.f32.mrf.mxu2 }
  0xc0   :  { %v578_v6 = vpop.f32.mrf.mxu3 }
  0xc1   :  { %v579_v7 = vadd.f32 %v578_v6, %v489_v5  ;;  %v451_v8 = vpop.f32.mrf.mxu0 }
  0xc2   :  { %v540_v9 = vpop.f32.mrf.mxu1 }
  0xc3   :  { %v734_v10 = vadd.f32 %v1181_v49, %v579_v7  ;;  %v541_v11 = vadd.f32 %v540_v9, %v451_v8 }
  0xc5   :  { %766 = vst [vmem:[#allocation8 + $0x90] sm:$0xff] %v734_v10  ;;  %v719_v12 = vadd.f32 %v1181_v49, %v541_v11 }
  0xc7   :  { %751 = vst [vmem:[#allocation8 + $0x18] sm:$0xff] %v719_v12  ;;  %v491_v13 = vpop.f32.mrf.mxu2 }
  0xc8   :  { %v580_v14 = vpop.f32.mrf.mxu3 }
  0xc9   :  { %v581_v15 = vadd.f32 %v580_v14, %v491_v13  ;;  %v454_v16 = vpop.f32.mrf.mxu0 }
  0xca   :  { %v543_v17 = vpop.f32.mrf.mxu1 }
  0xcb   :  { %v735_v18 = vadd.f32 %v1181_v49, %v581_v15  ;;  %v544_v19 = vadd.f32 %v543_v17, %v454_v16 }
  0xcd   :  { %767 = vst [vmem:[#allocation8 + $0x98] sm:$0xff] %v735_v18  ;;  %v720_v20 = vadd.f32 %v1181_v49, %v544_v19 }
  0xcf   :  { %752 = vst [vmem:[#allocation8 + $0x20] sm:$0xff] %v720_v20  ;;  %v494_v21 = vpop.f32.mrf.mxu2 }
  0xd0   :  { %v583_v22 = vpop.f32.mrf.mxu3 }
  0xd1   :  { %v584_v23 = vadd.f32 %v583_v22, %v494_v21  ;;  %v456_v24 = vpop.f32.mrf.mxu0 }
  0xd2   :  { %v545_v25 = vpop.f32.mrf.mxu1 }
  0xd3   :  { %v736_v26 = vadd.f32 %v1181_v49, %v584_v23  ;;  %v546_v27 = vadd.f32 %v545_v25, %v456_v24 }
  0xd5   :  { %768 = vst [vmem:[#allocation8 + $0xa0] sm:$0xff] %v736_v26  ;;  %v721_v28 = vadd.f32 %v1181_v49, %v546_v27 }
  0xd7   :  { %753 = vst [vmem:[#allocation8 + $0x28] sm:$0xff] %v721_v28  ;;  %v496_v29 = vpop.f32.mrf.mxu2 }
  0xd8   :  { %v585_v30 = vpop.f32.mrf.mxu3 }
  0xd9   :  { %v586_v31 = vadd.f32 %v585_v30, %v496_v29  ;;  %v459_v32 = vpop.f32.mrf.mxu0 }
  0xda   :  { %v548_v33 = vpop.f32.mrf.mxu1 }
  0xdb   :  { %v737_v34 = vadd.f32 %v1181_v49, %v586_v31  ;;  %v549_v35 = vadd.f32 %v548_v33, %v459_v32 }
  0xdd   :  { %769 = vst [vmem:[#allocation8 + $0xa8] sm:$0xff] %v737_v34  ;;  %v722_v36 = vadd.f32 %v1181_v49, %v549_v35 }
  0xdf   :  { %754 = vst [vmem:[#allocation8 + $0x30] sm:$0xff] %v722_v36  ;;  %v499_v37 = vpop.f32.mrf.mxu2 }
  0xe0   :  { %v588_v38 = vpop.f32.mrf.mxu3 }
  0xe1   :  { %v589_v39 = vadd.f32 %v588_v38, %v499_v37  ;;  %v461_v40 = vpop.f32.mrf.mxu0 }
  0xe2   :  { %v550_v41 = vpop.f32.mrf.mxu1 }
  0xe3   :  { %v738_v42 = vadd.f32 %v1181_v49, %v589_v39  ;;  %v551_v43 = vadd.f32 %v550_v41, %v461_v40 }
  0xe5   :  { %770 = vst [vmem:[#allocation8 + $0xb0] sm:$0xff] %v738_v42  ;;  %v723_v44 = vadd.f32 %v1181_v49, %v551_v43 }
  0xe7   :  { %755 = vst [vmem:[#allocation8 + $0x38] sm:$0xff] %v723_v44  ;;  %v501_v45 = vpop.f32.mrf.mxu2 }
  0xe8   :  { %v590_v46 = vpop.f32.mrf.mxu3 }
  0xe9   :  { %v591_v47 = vadd.f32 %v590_v46, %v501_v45  ;;  %v464_v48 = vpop.f32.mrf.mxu0 }
  0xea   :  { %v553_v50 = vpop.f32.mrf.mxu1 }
  0xeb   :  { %v739_v51 = vadd.f32 %v1181_v49, %v591_v47  ;;  %v554_v52 = vadd.f32 %v553_v50, %v464_v48 }
  0xed   :  { %771 = vst [vmem:[#allocation8 + $0xb8] sm:$0xff] %v739_v51  ;;  %v724_v53 = vadd.f32 %v1181_v49, %v554_v52 }
  0xef   :  { %756 = vst [vmem:[#allocation8 + $0x40] sm:$0xff] %v724_v53  ;;  %v504_v54 = vpop.f32.mrf.mxu2 }
  0xf0   :  { %v593_v55 = vpop.f32.mrf.mxu3 }
  0xf1   :  { %v594_v56 = vadd.f32 %v593_v55, %v504_v54  ;;  %v466_v57 = vpop.f32.mrf.mxu0 }
  0xf2   :  { %v555_v58 = vpop.f32.mrf.mxu1 }
  0xf3   :  { %v740_v59 = vadd.f32 %v1181_v49, %v594_v56  ;;  %v556_v60 = vadd.f32 %v555_v58, %v466_v57 }
  0xf5   :  { %772 = vst [vmem:[#allocation8 + $0xc0] sm:$0xff] %v740_v59  ;;  %v725_v61 = vadd.f32 %v1181_v49, %v556_v60 }
  0xf7   :  { %757 = vst [vmem:[#allocation8 + $0x48] sm:$0xff] %v725_v61  ;;  %v506_v62 = vpop.f32.mrf.mxu2 }
  0xf8   :  { %v595_v63 = vpop.f32.mrf.mxu3 }
  0xf9   :  { %v596_v0 = vadd.f32 %v595_v63, %v506_v62  ;;  %v469_v1 = vpop.f32.mrf.mxu0 }
  0xfa   :  { %v558_v2 = vpop.f32.mrf.mxu1 }
  0xfb   :  { %v741_v3 = vadd.f32 %v1181_v49, %v596_v0  ;;  %v559_v4 = vadd.f32 %v558_v2, %v469_v1 }
  0xfd   :  { %773 = vst [vmem:[#allocation8 + $0xc8] sm:$0xff] %v741_v3  ;;  %v726_v5 = vadd.f32 %v1181_v49, %v559_v4 }
  0xff   :  { %758 = vst [vmem:[#allocation8 + $0x50] sm:$0xff] %v726_v5  ;;  %v509_v6 = vpop.f32.mrf.mxu2 }
 0x100   :  { %v598_v7 = vpop.f32.mrf.mxu3 }
 0x101   :  { %v599_v8 = vadd.f32 %v598_v7, %v509_v6  ;;  %v471_v9 = vpop.f32.mrf.mxu0 }
 0x102   :  { %v560_v10 = vpop.f32.mrf.mxu1 }
 0x103   :  { %v742_v11 = vadd.f32 %v1181_v49, %v599_v8  ;;  %v561_v12 = vadd.f32 %v560_v10, %v471_v9 }
 0x105   :  { %774 = vst [vmem:[#allocation8 + $0xd0] sm:$0xff] %v742_v11  ;;  %v727_v13 = vadd.f32 %v1181_v49, %v561_v12 }
 0x107   :  { %759 = vst [vmem:[#allocation8 + $0x58] sm:$0xff] %v727_v13  ;;  %v511_v14 = vpop.f32.mrf.mxu2 }
 0x108   :  { %v600_v15 = vpop.f32.mrf.mxu3 }
 0x109   :  { %v601_v16 = vadd.f32 %v600_v15, %v511_v14  ;;  %v474_v17 = vpop.f32.mrf.mxu0 }
 0x10a   :  { %v563_v18 = vpop.f32.mrf.mxu1 }
 0x10b   :  { %v743_v19 = vadd.f32 %v1181_v49, %v601_v16  ;;  %v564_v20 = vadd.f32 %v563_v18, %v474_v17 }
 0x10d   :  { %775 = vst [vmem:[#allocation8 + $0xd8] sm:$0xff] %v743_v19  ;;  %v728_v21 = vadd.f32 %v1181_v49, %v564_v20 }
 0x10f   :  { %760 = vst [vmem:[#allocation8 + $0x60] sm:$0xff] %v728_v21  ;;  %v514_v22 = vpop.f32.mrf.mxu2 }
 0x110   :  { %v603_v23 = vpop.f32.mrf.mxu3 }
 0x111   :  { %v604_v24 = vadd.f32 %v603_v23, %v514_v22  ;;  %v476_v25 = vpop.f32.mrf.mxu0 }
 0x112   :  { %v565_v26 = vpop.f32.mrf.mxu1 }
 0x113   :  { %v744_v27 = vadd.f32 %v1181_v49, %v604_v24  ;;  %v566_v28 = vadd.f32 %v565_v26, %v476_v25 }
 0x115   :  { %776 = vst [vmem:[#allocation8 + $0xe0] sm:$0xff] %v744_v27  ;;  %v729_v29 = vadd.f32 %v1181_v49, %v566_v28 }
 0x117   :  { %761 = vst [vmem:[#allocation8 + $0x68] sm:$0xff] %v729_v29  ;;  %v516_v30 = vpop.f32.mrf.mxu2 }
 0x118   :  { %v605_v31 = vpop.f32.mrf.mxu3 }
 0x119   :  { %v606_v32 = vadd.f32 %v605_v31, %v516_v30  ;;  %v479_v33 = vpop.f32.mrf.mxu0 }
 0x11a   :  { %v568_v34 = vpop.f32.mrf.mxu1 }
 0x11b   :  { %v745_v35 = vadd.f32 %v1181_v49, %v606_v32  ;;  %v569_v36 = vadd.f32 %v568_v34, %v479_v33 }
 0x11d   :  { %777 = vst [vmem:[#allocation8 + $0xe8] sm:$0xff] %v745_v35  ;;  %v730_v37 = vadd.f32 %v1181_v49, %v569_v36 }
 0x11f   :  { %762 = vst [vmem:[#allocation8 + $0x70] sm:$0xff] %v730_v37  ;;  %v519_v38 = vpop.f32.mrf.mxu2 }
 0x120   :  { %v608_v39 = vpop.f32.mrf.mxu3 }
 0x121   :  { %v609_v40 = vadd.f32 %v608_v39, %v519_v38  ;;  %v481_v41 = vpop.f32.mrf.mxu0 }
 0x122   :  { %v570_v42 = vpop.f32.mrf.mxu1 }
 0x123   :  { %v746_v43 = vadd.f32 %v1181_v49, %v609_v40  ;;  %v571_v44 = vadd.f32 %v570_v42, %v481_v41 }
 0x125   :  { %778 = vst [vmem:[#allocation8 + $0xf0] sm:$0xff] %v746_v43  ;;  %v731_v45 = vadd.f32 %v1181_v49, %v571_v44 }
 0x127   :  { %763 = vst [vmem:[#allocation8 + $0x78] sm:$0xff] %v731_v45  ;;  %v521_v46 = vpop.f32.mrf.mxu2 }
 0x128   :  { %v610_v47 = vpop.f32.mrf.mxu3 }
 0x129   :  { %v611_v48 = vadd.f32 %v610_v47, %v521_v46 }
 0x12b   :  { %v747_v50 = vadd.f32 %v1181_v49, %v611_v48 }
 0x12d   :  { %779 = vst [vmem:[#allocation8 + $0xf8] sm:$0xff] %v747_v50 }
 0x12e   :  { %792 = dma.vmem_to_hbm [thread:$0]  %s785_s26, 4096, %s787_s29, [#allocation5], %s1143_s20, %s1143_s20, %s1144_s21  }
 0x12f   :  { %1140 = dma.done.wait [#allocation5], 4096  }
 0x130   :  { %1141 = vsyncadd [#allocation5], 4294963200 }
 0x131   :  { %797 = vsyncpa [#allocation4], 1 }
 0x132   :  { %798 = vsyncpa [#allocation7], 1 }
 0x133   :  { %799 = vsyncpa [#allocation5], 1 }

</bundles_post_ra>
